<compile_context>
chip_gen: v5e
topology: v5e:2x2
jax: 0.10.0
libtpu: 0.0.40
codegen_flags: <defaults>
</compile_context>

<pallas_src>
import functools

import jax
import jax.numpy as jnp
from jax.experimental import pallas as pl
from jax.experimental.pallas import tpu as pltpu

_LANE = 128
_SUBLANE = 8


def _round_up(n, m):
    return ((n + m - 1) // m) * m


def _ffnn_kernel(x_ref, w1_ref, b1_ref, w2_ref, b2_ref, w3_ref, b3_ref, o_ref):
    # x arrives f32 (unpadded K); cast to bf16 in-kernel (free: VALU slack).
    x = x_ref[...].astype(w1_ref.dtype)

    # Layer 1: bf16 x bf16 on the MXU, f32 accumulation; bias + ReLU in f32.
    h = jnp.dot(x, w1_ref[...], preferred_element_type=jnp.float32)
    h = jnp.maximum(h + b1_ref[...], 0.0)

    # Layer 2 (activations cast back to bf16 so the MXU runs bf16 x bf16).
    h = jnp.dot(h.astype(w2_ref.dtype), w2_ref[...],
                preferred_element_type=jnp.float32)
    h = jnp.maximum(h + b2_ref[...], 0.0)

    # Layer 3 (activation applied to the output, matching the PyTorch forward).
    h = jnp.dot(h.astype(w3_ref.dtype), w3_ref[...],
                preferred_element_type=jnp.float32)
    h = jnp.maximum(h + b3_ref[...], 0.0)

    # Lane-dense (multiple-of-128 wide), unmasked bf16 store.
    o_ref[...] = h.astype(o_ref.dtype)


def prepare_ffnn_params(w1, b1, w2, b2, w3, b3):
    """Pad every feature dim to a multiple of 128 and cast weights to bf16.

    Done ONCE at init, outside the jitted hot path.  Weights are expected
    already transposed to [in_features, out_features]; biases are [out].
    Returns (w1p, b1p, w2p, b2p, w3p, b3p).
    """
    in_size, h1 = w1.shape
    h2, out = w2.shape[1], w3.shape[1]
    n1, n2, n3 = (_round_up(d, _LANE) for d in (h1, h2, out))

    def padw(w, rows, cols):
        return jnp.pad(w.astype(jnp.bfloat16),
                       ((0, rows - w.shape[0]), (0, cols - w.shape[1])))

    def padb(b, cols):
        return jnp.pad(b.astype(jnp.float32).reshape(1, -1),
                       ((0, 0), (0, cols - b.shape[0])))

    # Note: w1's K dim (in_size) is intentionally NOT padded -- x streams in
    # unpadded and the BlockSpec uses the full array extent along K.
    return (padw(w1, in_size, n1), padb(b1, n1),
            padw(w2, n1, n2), padb(b2, n2),
            padw(w3, n2, n3), padb(b3, n3))


@functools.partial(jax.jit, static_argnames=("out_size", "block_m"))
def ffnn_forward(x, w1p, b1p, w2p, b2p, w3p, b3p, *, out_size, block_m=512):
    """FFNN forward: relu(relu(relu(x@w1+b1)@w2+b2)@w3+b3).

    x:   [B, input_size] float32 (unpadded)
    w*p: padded bf16 weights from `prepare_ffnn_params`
    b*p: padded (1, n) float32 biases
    Returns [B, out_size] float32.
    """
    batch, in_size = x.shape
    n1, n2, n3 = w1p.shape[1], w2p.shape[1], w3p.shape[1]

    # M tile: multiple of 8, capped so the batch grid has >= 2 steps (so the
    # "parallel" grid axis can shard across v7x's 2 TensorCores).
    tm = min(block_m, _round_up(pl.cdiv(batch, 2), _SUBLANE))
    tm = max(tm, _SUBLANE)
    grid = (pl.cdiv(batch, tm),)   # trailing partial block is masked by Pallas

    # Weight / bias blocks: constant block index -> DMA'd once, VMEM-resident;
    # single-buffered since they never re-fetch.
    def resident(shape):
        return pl.BlockSpec(shape, lambda i: (0, 0),
                            pipeline_mode=pl.Buffered(1))

    flops = 2 * batch * (in_size * n1 + n1 * n2 + n2 * n3)
    bytes_accessed = (x.size * 4                                  # x read (f32)
                      + (w1p.size + w2p.size + w3p.size) * 2      # bf16 weights
                      + (b1p.size + b2p.size + b3p.size) * 4      # f32 biases
                      + batch * n3 * 2)                           # bf16 output

    out_padded = pl.pallas_call(
        _ffnn_kernel,
        out_shape=jax.ShapeDtypeStruct((batch, n3), jnp.bfloat16),
        grid=grid,
        in_specs=[
            # x: streamed per batch tile, last dim == full array dim (no pad).
            pl.BlockSpec((tm, in_size), lambda i: (i, 0)),
            resident((in_size, n1)), resident((1, n1)),   # layer 1 params
            resident((n1, n2)), resident((1, n2)),        # layer 2 params
            resident((n2, n3)), resident((1, n3)),        # layer 3 params
        ],
        out_specs=pl.BlockSpec((tm, n3), lambda i: (i, 0)),
        compiler_params=pltpu.CompilerParams(
            # Batch tiles are independent -> shard across TCs on v7x megacore.
            dimension_semantics=("parallel",),
            # Fits every generation incl. v7x (64 MiB physical VMEM).
            vmem_limit_bytes=32 * 1024 * 1024,
        ),
        cost_estimate=pl.CostEstimate(
            flops=flops, transcendentals=0, bytes_accessed=bytes_accessed),
    )(x, w1p, b1p, w2p, b2p, w3p, b3p)

    # Strip lane padding of the output and upcast for downstream f32 consumers.
    return out_padded[:, :out_size].astype(jnp.float32)


def init_linear_params(key, in_features, out_features, dtype=jnp.float32):
    """Deterministic init mimicking nn.Linear's U(-1/sqrt(in), 1/sqrt(in))."""
    k_w, k_b = jax.random.split(key)
    bound = 1.0 / jnp.sqrt(jnp.asarray(in_features, dtype))
    # Stored already transposed: [in_features, out_features].
    w = jax.random.uniform(k_w, (in_features, out_features), dtype, -bound, bound)
    b = jax.random.uniform(k_b, (out_features,), dtype, -bound, bound)
    return w, b


def reference_forward(x, w1, b1, w2, b2, w3, b3, dtype=jnp.float32):
    """Pure-JAX reference. dtype controls the matmul operand precision
    (float32 = PyTorch semantics, bfloat16 = same arithmetic as the kernel)."""
    def layer(h, w, b):
        y = jnp.dot(h.astype(dtype), w.astype(dtype),
                    preferred_element_type=jnp.float32) + b.astype(jnp.float32)
        return jnp.maximum(y, 0.0)  # ReLU, matching self.activation

    h = layer(x, w1, b1)
    h = layer(h, w2, b2)
    return layer(h, w3, b3)


if __name__ == "__main__":
    key = jax.random.PRNGKey(0)
    k_x, k1, k2, k3 = jax.random.split(key, 4)

    # Module dims stay small; batch = 256 with block_m = 512 -> tm = 128, a
    # 2-step batch grid (exercises streaming x/out BlockSpecs + megacore path).
    batch = 256
    input_size = 32
    hidden_size_1 = 64
    hidden_size_2 = 32
    output_size = 16

    x = jax.random.normal(k_x, (batch, input_size), jnp.float32)
    w1, b1 = init_linear_params(k1, input_size, hidden_size_1)
    w2, b2 = init_linear_params(k2, hidden_size_1, hidden_size_2)
    w3, b3 = init_linear_params(k3, hidden_size_2, output_size)

    # Pad / cast the parameters ONCE, outside the jitted hot path.
    params = jax.block_until_ready(prepare_ffnn_params(w1, b1, w2, b2, w3, b3))

    out = ffnn_forward(x, *params, out_size=output_size, block_m=512)
    out = jax.block_until_ready(out)
    assert out.shape == (batch, output_size)
    assert out.dtype == jnp.float32

    # Primary check: same arithmetic as the kernel (bf16 operands, f32
    # accumulate, final value rounded to bf16 by the lane-dense store).
    ref_bf16 = reference_forward(x, w1, b1, w2, b2, w3, b3, dtype=jnp.bfloat16)
    ref_bf16 = ref_bf16.astype(jnp.bfloat16).astype(jnp.float32)
    assert jnp.allclose(out, ref_bf16, atol=2e-2, rtol=2e-2)

    # Sanity check against full-f32 PyTorch-equivalent semantics (bf16 noise).
    ref_f32 = reference_forward(x, w1, b1, w2, b2, w3, b3, dtype=jnp.float32)
    assert jnp.allclose(out, ref_f32, atol=1e-1, rtol=5e-2)

    print("KERNEL_OK")
</pallas_src>

<mosaic_0001>
module attributes {stable_mosaic.version = 11 : i64} {
  func.func @_ffnn_kernel(%arg0: i32, %arg1: memref<128x32xf32, #tpu.memory_space<vmem>>, %arg2: memref<32x128xbf16, #tpu.memory_space<vmem>>, %arg3: memref<1x128xf32, #tpu.memory_space<vmem>>, %arg4: memref<128x128xbf16, #tpu.memory_space<vmem>>, %arg5: memref<1x128xf32, #tpu.memory_space<vmem>>, %arg6: memref<128x128xbf16, #tpu.memory_space<vmem>>, %arg7: memref<1x128xf32, #tpu.memory_space<vmem>>, %arg8: memref<128x128xbf16, #tpu.memory_space<vmem>>) attributes {dimension_semantics = [#tpu.dimension_semantics<parallel>], iteration_bounds = array<i64: 2>, scalar_prefetch = 0 : i64, scratch_operands = 0 : i64, tpu.core_type = #tpu.core_type<tc>, window_params = [{transform_indices = @transform_0, window_bounds = array<i64: 128, 32>}, {pipeline_mode = #tpu.pipeline_mode<synchronous>, transform_indices = @transform_1, window_bounds = array<i64: 32, 128>}, {pipeline_mode = #tpu.pipeline_mode<synchronous>, transform_indices = @transform_2, window_bounds = array<i64: 1, 128>}, {pipeline_mode = #tpu.pipeline_mode<synchronous>, transform_indices = @transform_3, window_bounds = array<i64: 128, 128>}, {pipeline_mode = #tpu.pipeline_mode<synchronous>, transform_indices = @transform_4, window_bounds = array<i64: 1, 128>}, {pipeline_mode = #tpu.pipeline_mode<synchronous>, transform_indices = @transform_5, window_bounds = array<i64: 128, 128>}, {pipeline_mode = #tpu.pipeline_mode<synchronous>, transform_indices = @transform_6, window_bounds = array<i64: 1, 128>}, {transform_indices = @transform_7, window_bounds = array<i64: 128, 128>}]} {
    %c0 = arith.constant 0 : index
    %c0_0 = arith.constant 0 : index
    %0 = vector.load %arg1[%c0, %c0_0] : memref<128x32xf32, #tpu.memory_space<vmem>>, vector<128x32xf32>
    %1 = arith.truncf %0 : vector<128x32xf32> to vector<128x32xbf16>
    %c0_1 = arith.constant 0 : index
    %c0_2 = arith.constant 0 : index
    %2 = vector.load %arg2[%c0_1, %c0_2] : memref<32x128xbf16, #tpu.memory_space<vmem>>, vector<32x128xbf16>
    %cst = arith.constant dense<0.000000e+00> : vector<128x128xf32>
    %3 = tpu.matmul %1, %2, %cst {dimension_numbers = #tpu.dot_dimension_numbers<[1], [0], [0], [1], [0, 0, 1, 1], [], []>} : vector<128x32xbf16>, vector<32x128xbf16>, vector<128x128xf32> -> vector<128x128xf32>
    %c0_3 = arith.constant 0 : index
    %c0_4 = arith.constant 0 : index
    %4 = vector.load %arg3[%c0_3, %c0_4] : memref<1x128xf32, #tpu.memory_space<vmem>>, vector<1x128xf32>
    %5 = vector.broadcast %4 : vector<1x128xf32> to vector<128x128xf32>
    %6 = arith.addf %3, %5 : vector<128x128xf32>
    %cst_5 = arith.constant 0.000000e+00 : f32
    %7 = vector.broadcast %cst_5 : f32 to vector<128x128xf32>
    %8 = arith.maximumf %6, %7 : vector<128x128xf32>
    %9 = arith.truncf %8 : vector<128x128xf32> to vector<128x128xbf16>
    %c0_6 = arith.constant 0 : index
    %c0_7 = arith.constant 0 : index
    %10 = vector.load %arg4[%c0_6, %c0_7] : memref<128x128xbf16, #tpu.memory_space<vmem>>, vector<128x128xbf16>
    %cst_8 = arith.constant dense<0.000000e+00> : vector<128x128xf32>
    %11 = tpu.matmul %9, %10, %cst_8 {dimension_numbers = #tpu.dot_dimension_numbers<[1], [0], [0], [1], [0, 0, 1, 1], [], []>} : vector<128x128xbf16>, vector<128x128xbf16>, vector<128x128xf32> -> vector<128x128xf32>
    %c0_9 = arith.constant 0 : index
    %c0_10 = arith.constant 0 : index
    %12 = vector.load %arg5[%c0_9, %c0_10] : memref<1x128xf32, #tpu.memory_space<vmem>>, vector<1x128xf32>
    %13 = vector.broadcast %12 : vector<1x128xf32> to vector<128x128xf32>
    %14 = arith.addf %11, %13 : vector<128x128xf32>
    %cst_11 = arith.constant 0.000000e+00 : f32
    %15 = vector.broadcast %cst_11 : f32 to vector<128x128xf32>
    %16 = arith.maximumf %14, %15 : vector<128x128xf32>
    %17 = arith.truncf %16 : vector<128x128xf32> to vector<128x128xbf16>
    %c0_12 = arith.constant 0 : index
    %c0_13 = arith.constant 0 : index
    %18 = vector.load %arg6[%c0_12, %c0_13] : memref<128x128xbf16, #tpu.memory_space<vmem>>, vector<128x128xbf16>
    %cst_14 = arith.constant dense<0.000000e+00> : vector<128x128xf32>
    %19 = tpu.matmul %17, %18, %cst_14 {dimension_numbers = #tpu.dot_dimension_numbers<[1], [0], [0], [1], [0, 0, 1, 1], [], []>} : vector<128x128xbf16>, vector<128x128xbf16>, vector<128x128xf32> -> vector<128x128xf32>
    %c0_15 = arith.constant 0 : index
    %c0_16 = arith.constant 0 : index
    %20 = vector.load %arg7[%c0_15, %c0_16] : memref<1x128xf32, #tpu.memory_space<vmem>>, vector<1x128xf32>
    %21 = vector.broadcast %20 : vector<1x128xf32> to vector<128x128xf32>
    %22 = arith.addf %19, %21 : vector<128x128xf32>
    %cst_17 = arith.constant 0.000000e+00 : f32
    %23 = vector.broadcast %cst_17 : f32 to vector<128x128xf32>
    %24 = arith.maximumf %22, %23 : vector<128x128xf32>
    %25 = arith.truncf %24 : vector<128x128xf32> to vector<128x128xbf16>
    %c0_18 = arith.constant 0 : index
    %c0_19 = arith.constant 0 : index
    %26 = vector.load %arg8[%c0_18, %c0_19] : memref<128x128xbf16, #tpu.memory_space<vmem>>, vector<128x128xbf16>
    tpu.vector_store %arg8[%c0_18, %c0_19], %25 {strides = array<i32>} : memref<128x128xbf16, #tpu.memory_space<vmem>>, vector<128x128xbf16>,
    return
  }
  func.func @transform_0(%arg0: i32) -> (i32, i32) {
    %c0_i32 = arith.constant 0 : i32
    %c0_i32_0 = arith.constant 0 : i32
    return %arg0, %c0_i32 : i32, i32
  }
  func.func @transform_1(%arg0: i32) -> (i32, i32) {
    %c0_i32 = arith.constant 0 : i32
    %c0_i32_0 = arith.constant 0 : i32
    %c0_i32_1 = arith.constant 0 : i32
    return %c0_i32, %c0_i32_0 : i32, i32
  }
  func.func @transform_2(%arg0: i32) -> (i32, i32) {
    %c0_i32 = arith.constant 0 : i32
    %c0_i32_0 = arith.constant 0 : i32
    %c0_i32_1 = arith.constant 0 : i32
    return %c0_i32, %c0_i32_0 : i32, i32
  }
  func.func @transform_3(%arg0: i32) -> (i32, i32) {
    %c0_i32 = arith.constant 0 : i32
    %c0_i32_0 = arith.constant 0 : i32
    %c0_i32_1 = arith.constant 0 : i32
    return %c0_i32, %c0_i32_0 : i32, i32
  }
  func.func @transform_4(%arg0: i32) -> (i32, i32) {
    %c0_i32 = arith.constant 0 : i32
    %c0_i32_0 = arith.constant 0 : i32
    %c0_i32_1 = arith.constant 0 : i32
    return %c0_i32, %c0_i32_0 : i32, i32
  }
  func.func @transform_5(%arg0: i32) -> (i32, i32) {
    %c0_i32 = arith.constant 0 : i32
    %c0_i32_0 = arith.constant 0 : i32
    %c0_i32_1 = arith.constant 0 : i32
    return %c0_i32, %c0_i32_0 : i32, i32
  }
  func.func @transform_6(%arg0: i32) -> (i32, i32) {
    %c0_i32 = arith.constant 0 : i32
    %c0_i32_0 = arith.constant 0 : i32
    %c0_i32_1 = arith.constant 0 : i32
    return %c0_i32, %c0_i32_0 : i32, i32
  }
  func.func @transform_7(%arg0: i32) -> (i32, i32) {
    %c0_i32 = arith.constant 0 : i32
    %c0_i32_0 = arith.constant 0 : i32
    return %arg0, %c0_i32 : i32, i32
  }
}

</mosaic_0001>

<bundles_post_ra>
// kernel: ffnn_forward.1
= control target key start
LH: loop header
LB: loop body
LE: loop exit
PB: predicated region body
PF: predicated region fallthrough
CT: control target
= control target key end

     0   :  { %s1018_s24 = smov 0   ;;  %s1156_s0 = inlined_call_operand.vmem [shape: f32[256,32], index: 0, kind: input, shape index: {}]   ;;  %s1157_s1 = inlined_call_operand.vmem [shape: bf16[32,128], index: 1, kind: input, shape index: {}]   ;;  %s1158_s2 = inlined_call_operand.vmem [shape: f32[1,128], index: 2, kind: input, shape index: {}]   ;;  %s1159_s3 = inlined_call_operand.vmem [shape: bf16[128,128], index: 3, kind: input, shape index: {}]   ;;  %s1160_s4 = inlined_call_operand.vmem [shape: f32[1,128], index: 4, kind: input, shape index: {}]   ;;  %s1161_s5 = inlined_call_operand.vmem [shape: bf16[128,128], index: 5, kind: input, shape index: {}]   ;;  %s1162_s6 = inlined_call_operand.vmem [shape: f32[1,128], index: 6, kind: input, shape index: {}]   ;;  %s1163_s7 = inlined_call_operand.vmem [shape: bf16[256,128], index: 7, kind: output, shape index: {}]  }
   0x1 LB: > { %s787_s25 = sadd.s32 4294967295, %s976_s24   ;;  %p791_p0 = scmp.ge.s32.totalorder %s976_s24, 1  ;;  %s976_s24 = sphi %s1018_s24, %s17_s24  }
   0x2   : > { %p238_p1 = scmp.lt.s32.totalorder %s976_s24, 3 }
   0x4   : > { %p239_p2 = pnand %p791_p0, %p238_p1 }
   0x5   : > { %s792_s28 = sshll.u32 (!%p239_p2), %s787_s25, 4 }
   0x6   : > { %242 = sbr.rel (%p239_p2) target bundleno = 564 (0x234), region = 48  ;;  %p271_p3 = scmp.lt.s32.totalorder (!%p239_p2), %s792_s28, 31 }
   0xb   : > { %v879_v0 = vld [vmem:[%s1157_s1 + $0x8] sm:$0xff]  ;;  %v878_v1 = vld [vmem:[%s1157_s1] sm:$0xff]  ;;  %s1165_s28 = smov (!%p271_p3, %s792_s28), 31  ;;  %vm327_vm0 = vcmask 261120   ;;  %v887_v17 = vld [vmem:[%s1159_s3 + $0x38] sm:$0xff] }
   0xc   : > { %358 = vmatpush.bf16.msra.mxu0 %v879_v0  ;;  %s793_s8 = sshll.u32 %s1165_s28, 3  ;;  %493 = vmatpush.bf16.msra.mxu1 %v887_v17  ;;  %v886_v21 = vld [vmem:[%s1159_s3 + $0x30] sm:$0xff]  ;;  %v885_v22 = vld [vmem:[%s1159_s3 + $0x28] sm:$0xff]  ;;  %v884_v23 = vld [vmem:[%s1159_s3 + $0x20] sm:$0xff] }
   0xd   : > { %s1038_s11 = scalar_lea.vmem %s1156_s0, %s793_s8  ;;  %943 = vmatpush.bf16.msra.mxu3 %v887_v17  ;;  %v883_v26 = vld [vmem:[%s1159_s3 + $0x18] sm:$0xff]  ;;  %v882_v28 = vld [vmem:[%s1159_s3 + $0x10] sm:$0xff]  ;;  %v881_v29 = vld [vmem:[%s1159_s3 + $0x8] sm:$0xff]  ;;  %s795_s8 = sshll.u32 %s1165_s28, 2 }
   0xe   : > { %v283_v2 = vld [vmem:[%s1038_s11] sm:$0xff]  ;;  %v284_v3 = vld [vmem:[%s1038_s11 + $0x8] sm:$0xff]  ;;  %v285_v5 = vld [vmem:[%s1038_s11 + $0x10] sm:$0xff] }
   0xf   : > { %v299_v4 = vpack.c.bf16 %v284_v3, %v283_v2  ;;  %v286_v6 = vld [vmem:[%s1038_s11 + $0x18] sm:$0xff]  ;;  %v287_v8 = vld [vmem:[%s1038_s11 + $0x20] sm:$0xff]  ;;  %v288_v9 = vld [vmem:[%s1038_s11 + $0x28] sm:$0xff] }
  0x10   : > { %359 = vmatpush.bf16.msra.mxu0 %v878_v1  ;;  %v300_v7 = vpack.c.bf16 %v286_v6, %v285_v5  ;;  %v301_v10 = vpack.c.bf16 %v288_v9, %v287_v8  ;;  %v289_v11 = vld [vmem:[%s1038_s11 + $0x30] sm:$0xff]  ;;  %v290_v12 = vld [vmem:[%s1038_s11 + $0x38] sm:$0xff]  ;;  %v291_v14 = vld [vmem:[%s1038_s11 + $0x40] sm:$0xff]  ;;  %494 = vmatpush.bf16.msra.mxu1 %v886_v21 }
  0x11   : > { %v302_v13 = vpack.c.bf16 %v290_v12, %v289_v11  ;;  %v292_v15 = vld [vmem:[%s1038_s11 + $0x48] sm:$0xff]  ;;  %v293_v18 = vld [vmem:[%s1038_s11 + $0x50] sm:$0xff]  ;;  %v294_v19 = vld [vmem:[%s1038_s11 + $0x58] sm:$0xff]  ;;  %944 = vmatpush.bf16.msra.mxu3 %v886_v21 }
  0x12   : > { %v303_v16 = vpack.c.bf16 %v292_v15, %v291_v14  ;;  %v304_v20 = vpack.c.bf16 %v294_v19, %v293_v18  ;;  %v295_v24 = vld [vmem:[%s1038_s11 + $0x60] sm:$0xff]  ;;  %v296_v25 = vld [vmem:[%s1038_s11 + $0x68] sm:$0xff]  ;;  %v297_v31 = vld [vmem:[%s1038_s11 + $0x70] sm:$0xff] }
  0x13   : > { %804 = vmatmul.msk.bf16.vlgmr.msra.gmra.mxu0 %vm327_vm0, %v299_v4  ;;  %v305_v27 = vpack.c.bf16 %v296_v25, %v295_v24  ;;  %v880_v30 = vld [vmem:[%s1159_s3] sm:$0xff]  ;;  %v298_v32 = vld [vmem:[%s1038_s11 + $0x78] sm:$0xff]  ;;  %v894_v14 = vld [vmem:[%s1161_s5 + $0x30] sm:$0xff]  ;;  %s1143_s11 = scalar_lea.vmem %s1163_s7, %s795_s8 }
  0x14   : > { %495 = vmatpush.bf16.msra.mxu1 %v885_v22  ;;  %v306_v33 = vpack.c.bf16 %v298_v32, %v297_v31  ;;  %v1091_v35 = vld [vmem:[%s1158_s2] ss:$0 sm:$0xff]  ;;  %v891_v21 = vld [vmem:[%s1161_s5 + $0x18] sm:$0xff]  ;;  %v890_v25 = vld [vmem:[%s1161_s5 + $0x10] sm:$0xff] }
  0x15   : > { %945 = vmatpush.bf16.msra.mxu3 %v885_v22  ;;  %v892_v17 = vld [vmem:[%s1161_s5 + $0x20] sm:$0xff] }
  0x18   : > { %496 = vmatpush.bf16.msra.mxu1 %v884_v23 }
  0x19   : > { %946 = vmatpush.bf16.msra.mxu3 %v884_v23 }
  0x1c   : > { %497 = vmatpush.bf16.msra.mxu1 %v883_v26 }
  0x1d   : > { %947 = vmatpush.bf16.msra.mxu3 %v883_v26 }
  0x20   : > { %498 = vmatpush.bf16.msra.mxu1 %v882_v28 }
  0x21   : > { %948 = vmatpush.bf16.msra.mxu3 %v882_v28  ;;  %v888_v28 = vld [vmem:[%s1161_s5] sm:$0xff] }
  0x23   : > { %805 = vmatmul.msk.bf16.gmra.mxu0 %vm327_vm0, %v300_v7 }
  0x24   : > { %499 = vmatpush.bf16.msra.mxu1 %v881_v29 }
  0x25   : > { %949 = vmatpush.bf16.msra.mxu3 %v881_v29 }
  0x28   : > { %500 = vmatpush.bf16.msra.mxu1 %v880_v30 }
  0x29   : > { %950 = vmatpush.bf16.msra.mxu3 %v880_v30 }
  0x33   : > { %806 = vmatmul.msk.bf16.gmra.mxu0 %vm327_vm0, %v301_v10  ;;  %v895_v10 = vld [vmem:[%s1161_s5 + $0x38] sm:$0xff] }
  0x34   : > { %634 = vmatpush.bf16.msra.mxu2 %v895_v10  ;;  %951 = vmatpush.bf16.msrb.mxu3 %v895_v10 }
  0x38   : > { %635 = vmatpush.bf16.msra.mxu2 %v894_v14  ;;  %952 = vmatpush.bf16.msrb.mxu3 %v894_v14 }
  0x43   : > { %807 = vmatmul.msk.bf16.gmra.mxu0 %vm327_vm0, %v302_v13 }
  0x53   : > { %808 = vmatmul.msk.bf16.gmra.mxu0 %vm327_vm0, %v303_v16  ;;  %v893_v16 = vld [vmem:[%s1161_s5 + $0x28] sm:$0xff] }
  0x54   : > { %636 = vmatpush.bf16.msra.mxu2 %v893_v16  ;;  %953 = vmatpush.bf16.msrb.mxu3 %v893_v16 }
  0x58   : > { %637 = vmatpush.bf16.msra.mxu2 %v892_v17  ;;  %954 = vmatpush.bf16.msrb.mxu3 %v892_v17 }
  0x5c   : > { %638 = vmatpush.bf16.msra.mxu2 %v891_v21  ;;  %955 = vmatpush.bf16.msrb.mxu3 %v891_v21 }
  0x60   : > { %639 = vmatpush.bf16.msra.mxu2 %v890_v25  ;;  %956 = vmatpush.bf16.msrb.mxu3 %v890_v25 }
  0x63   : > { %809 = vmatmul.msk.bf16.gmra.mxu0 %vm327_vm0, %v304_v20 }
  0x73   : > { %810 = vmatmul.msk.bf16.gmra.mxu0 %vm327_vm0, %v305_v27  ;;  %v889_v27 = vld [vmem:[%s1161_s5 + $0x8] sm:$0xff] }
  0x74   : > { %640 = vmatpush.bf16.msra.mxu2 %v889_v27  ;;  %957 = vmatpush.bf16.msrb.mxu3 %v889_v27 }
  0x78   : > { %641 = vmatpush.bf16.msra.mxu2 %v888_v28  ;;  %958 = vmatpush.bf16.msrb.mxu3 %v888_v28 }
  0x83   : > { %811 = vmatmul.msk.bf16.gmra.mxu0 %vm327_vm0, %v306_v33 }
  0x90   : > { %v361_v34 = vpop.f32.mrf.mxu0 }
  0x91   : > { %v362_v36 = vadd.f32 %v1091_v35, %v361_v34 }
  0x93   : > { %v401_v39 = vmax.f32 %v362_v36, 0.0 }
  0x98   : > { %v363_v37 = vpop.f32.mrf.mxu0 }
  0x99   : > { %v364_v38 = vadd.f32 %v1091_v35, %v363_v37  ;;  %v968_v37 = vld [vmem:[%s1160_s4] ss:$0 sm:$0xff] }
  0x9b   : > { %v402_v40 = vmax.f32 %v364_v38, 0.0 }
  0x9d   : > { %v417_v41 = vpack.c.bf16 %v402_v40, %v401_v39 }
  0x9f   : > { %501 = vmatmul.bf16.vlgmr.msra.gmra.mxu1 %v417_v41 }
  0xa0   : > { %v366_v42 = vpop.f32.mrf.mxu0 }
  0xa1   : > { %v367_v43 = vadd.f32 %v1091_v35, %v366_v42 }
  0xa3   : > { %v403_v46 = vmax.f32 %v367_v43, 0.0 }
  0xa8   : > { %v368_v44 = vpop.f32.mrf.mxu0 }
  0xa9   : > { %v369_v45 = vadd.f32 %v1091_v35, %v368_v44 }
  0xab   : > { %v404_v47 = vmax.f32 %v369_v45, 0.0 }
  0xad   : > { %v418_v48 = vpack.c.bf16 %v404_v47, %v403_v46 }
  0xaf   : > { %506 = vmatmul.bf16.gmra.mxu1 %v418_v48 }
  0xb0   : > { %v371_v49 = vpop.f32.mrf.mxu0 }
  0xb1   : > { %v372_v50 = vadd.f32 %v1091_v35, %v371_v49 }
  0xb3   : > { %v405_v53 = vmax.f32 %v372_v50, 0.0 }
  0xb8   : > { %v373_v51 = vpop.f32.mrf.mxu0 }
  0xb9   : > { %v374_v52 = vadd.f32 %v1091_v35, %v373_v51 }
  0xbb   : > { %v406_v54 = vmax.f32 %v374_v52, 0.0 }
  0xbd   : > { %v419_v55 = vpack.c.bf16 %v406_v54, %v405_v53 }
  0xbf   : > { %511 = vmatmul.bf16.gmra.mxu1 %v419_v55 }
  0xc0   : > { %v376_v56 = vpop.f32.mrf.mxu0 }
  0xc1   : > { %v377_v57 = vadd.f32 %v1091_v35, %v376_v56 }
  0xc3   : > { %v407_v60 = vmax.f32 %v377_v57, 0.0 }
  0xc8   : > { %v378_v58 = vpop.f32.mrf.mxu0 }
  0xc9   : > { %v379_v59 = vadd.f32 %v1091_v35, %v378_v58 }
  0xcb   : > { %v408_v61 = vmax.f32 %v379_v59, 0.0 }
  0xcd   : > { %v420_v62 = vpack.c.bf16 %v408_v61, %v407_v60 }
  0xcf   : > { %516 = vmatmul.bf16.gmra.mxu1 %v420_v62 }
  0xd0   : > { %v381_v63 = vpop.f32.mrf.mxu0 }
  0xd1   : > { %v382_v0 = vadd.f32 %v1091_v35, %v381_v63 }
  0xd3   : > { %v409_v3 = vmax.f32 %v382_v0, 0.0 }
  0xd8   : > { %v383_v1 = vpop.f32.mrf.mxu0 }
  0xd9   : > { %v384_v2 = vadd.f32 %v1091_v35, %v383_v1 }
  0xdb   : > { %v410_v4 = vmax.f32 %v384_v2, 0.0 }
  0xdd   : > { %v421_v5 = vpack.c.bf16 %v410_v4, %v409_v3 }
  0xdf   : > { %521 = vmatmul.bf16.gmra.mxu1 %v421_v5 }
  0xe0   : > { %v386_v6 = vpop.f32.mrf.mxu0 }
  0xe1   : > { %v387_v7 = vadd.f32 %v1091_v35, %v386_v6 }
  0xe3   : > { %v411_v11 = vmax.f32 %v387_v7, 0.0 }
  0xe8   : > { %v388_v8 = vpop.f32.mrf.mxu0 }
  0xe9   : > { %v389_v9 = vadd.f32 %v1091_v35, %v388_v8 }
  0xeb   : > { %v412_v12 = vmax.f32 %v389_v9, 0.0 }
  0xed   : > { %v422_v13 = vpack.c.bf16 %v412_v12, %v411_v11 }
  0xef   : > { %526 = vmatmul.bf16.gmra.mxu1 %v422_v13 }
  0xf0   : > { %v391_v15 = vpop.f32.mrf.mxu0 }
  0xf1   : > { %v392_v18 = vadd.f32 %v1091_v35, %v391_v15 }
  0xf3   : > { %v413_v22 = vmax.f32 %v392_v18, 0.0 }
  0xf8   : > { %v393_v19 = vpop.f32.mrf.mxu0 }
  0xf9   : > { %v394_v20 = vadd.f32 %v1091_v35, %v393_v19 }
  0xfb   : > { %v414_v23 = vmax.f32 %v394_v20, 0.0 }
  0xfd   : > { %v423_v24 = vpack.c.bf16 %v414_v23, %v413_v22 }
  0xff   : > { %531 = vmatmul.bf16.vlgmr.msra.gmra.mxu3 %v423_v24 }
 0x100   : > { %v396_v26 = vpop.f32.mrf.mxu0 }
 0x101   : > { %v397_v29 = vadd.f32 %v1091_v35, %v396_v26 }
 0x103   : > { %v415_v32 = vmax.f32 %v397_v29, 0.0  ;;  %v969_v29 = vld [vmem:[%s1162_s6] ss:$0 sm:$0xff] }
 0x108   : > { %v398_v30 = vpop.f32.mrf.mxu0 }
 0x109   : > { %v399_v31 = vadd.f32 %v1091_v35, %v398_v30 }
 0x10b   : > { %v416_v33 = vmax.f32 %v399_v31, 0.0 }
 0x10d   : > { %v424_v34 = vpack.c.bf16 %v416_v33, %v415_v32 }
 0x10f   : > { %536 = vmatmul.bf16.gmra.mxu3 %v424_v34 }
 0x11c   : > { %v502_v36 = vpop.f32.mrf.mxu1 }
 0x11d   : > { %v503_v38 = vadd.f32 %v968_v37, %v502_v36 }
 0x11f   : > { %v542_v41 = vmax.f32 %v503_v38, 0.0 }
 0x124   : > { %v504_v39 = vpop.f32.mrf.mxu1 }
 0x125   : > { %v505_v40 = vadd.f32 %v968_v37, %v504_v39 }
 0x127   : > { %v543_v42 = vmax.f32 %v505_v40, 0.0 }
 0x129   : > { %v558_v43 = vpack.c.bf16 %v543_v42, %v542_v41 }
 0x12b   : > { %642 = vmatmul.bf16.vlgmr.msra.gmra.mxu2 %v558_v43 }
 0x12c   : > { %v507_v44 = vpop.f32.mrf.mxu1 }
 0x12d   : > { %v508_v45 = vadd.f32 %v968_v37, %v507_v44 }
 0x12f   : > { %v544_v47 = vmax.f32 %v508_v45, 0.0 }
 0x134   : > { %v509_v46 = vpop.f32.mrf.mxu1 }
 0x135   : > { %v510_v35 = vadd.f32 %v968_v37, %v509_v46 }
 0x137   : > { %v545_v48 = vmax.f32 %v510_v35, 0.0 }
 0x139   : > { %v559_v49 = vpack.c.bf16 %v545_v48, %v544_v47 }
 0x13b   : > { %647 = vmatmul.bf16.gmra.mxu2 %v559_v49 }
 0x13c   : > { %v512_v50 = vpop.f32.mrf.mxu1 }
 0x13d   : > { %v513_v51 = vadd.f32 %v968_v37, %v512_v50 }
 0x13f   : > { %v546_v54 = vmax.f32 %v513_v51, 0.0 }
 0x144   : > { %v514_v52 = vpop.f32.mrf.mxu1 }
 0x145   : > { %v515_v53 = vadd.f32 %v968_v37, %v514_v52 }
 0x147   : > { %v547_v55 = vmax.f32 %v515_v53, 0.0 }
 0x149   : > { %v560_v56 = vpack.c.bf16 %v547_v55, %v546_v54 }
 0x14b   : > { %652 = vmatmul.bf16.gmra.mxu2 %v560_v56 }
 0x14c   : > { %v517_v57 = vpop.f32.mrf.mxu1 }
 0x14d   : > { %v518_v58 = vadd.f32 %v968_v37, %v517_v57 }
 0x14f   : > { %v548_v61 = vmax.f32 %v518_v58, 0.0 }
 0x154   : > { %v519_v59 = vpop.f32.mrf.mxu1 }
 0x155   : > { %v520_v60 = vadd.f32 %v968_v37, %v519_v59 }
 0x157   : > { %v549_v62 = vmax.f32 %v520_v60, 0.0 }
 0x159   : > { %v561_v63 = vpack.c.bf16 %v549_v62, %v548_v61 }
 0x15b   : > { %657 = vmatmul.bf16.gmra.mxu2 %v561_v63 }
 0x15c   : > { %v522_v0 = vpop.f32.mrf.mxu1 }
 0x15d   : > { %v523_v1 = vadd.f32 %v968_v37, %v522_v0 }
 0x15f   : > { %v550_v4 = vmax.f32 %v523_v1, 0.0 }
 0x164   : > { %v524_v2 = vpop.f32.mrf.mxu1 }
 0x165   : > { %v525_v3 = vadd.f32 %v968_v37, %v524_v2 }
 0x167   : > { %v551_v5 = vmax.f32 %v525_v3, 0.0 }
 0x169   : > { %v562_v6 = vpack.c.bf16 %v551_v5, %v550_v4 }
 0x16b   : > { %662 = vmatmul.bf16.gmra.mxu2 %v562_v6 }
 0x16c   : > { %v527_v7 = vpop.f32.mrf.mxu1 }
 0x16d   : > { %v528_v8 = vadd.f32 %v968_v37, %v527_v7 }
 0x16f   : > { %v552_v11 = vmax.f32 %v528_v8, 0.0 }
 0x174   : > { %v529_v9 = vpop.f32.mrf.mxu1 }
 0x175   : > { %v530_v10 = vadd.f32 %v968_v37, %v529_v9 }
 0x177   : > { %v553_v12 = vmax.f32 %v530_v10, 0.0 }
 0x179   : > { %v563_v13 = vpack.c.bf16 %v553_v12, %v552_v11 }
 0x17b   : > { %667 = vmatmul.bf16.gmra.mxu2 %v563_v13 }
 0x182   : > { %v532_v14 = vpop.f32.mrf.mxu3 }
 0x183   : > { %v533_v15 = vadd.f32 %v968_v37, %v532_v14 }
 0x185   : > { %v554_v18 = vmax.f32 %v533_v15, 0.0 }
 0x18a   : > { %v534_v16 = vpop.f32.mrf.mxu3 }
 0x18b   : > { %v535_v17 = vadd.f32 %v968_v37, %v534_v16 }
 0x18d   : > { %v555_v19 = vmax.f32 %v535_v17, 0.0 }
 0x18f   : > { %v564_v20 = vpack.c.bf16 %v555_v19, %v554_v18 }
 0x191   : > { %672 = vmatmul.bf16.vlgmr.msrb.gmra.mxu3 %v564_v20 }
 0x192   : > { %v537_v21 = vpop.f32.mrf.mxu3 }
 0x193   : > { %v538_v22 = vadd.f32 %v968_v37, %v537_v21 }
 0x195   : > { %v556_v25 = vmax.f32 %v538_v22, 0.0 }
 0x19a   : > { %v539_v23 = vpop.f32.mrf.mxu3 }
 0x19b   : > { %v540_v24 = vadd.f32 %v968_v37, %v539_v23 }
 0x19d   : > { %v557_v26 = vmax.f32 %v540_v24, 0.0 }
 0x19f   : > { %v565_v27 = vpack.c.bf16 %v557_v26, %v556_v25 }
 0x1a1   : > { %677 = vmatmul.bf16.gmra.mxu3 %v565_v27 }
 0x1ae   : > { %v643_v28 = vpop.f32.mrf.mxu2 }
 0x1af   : > { %v644_v30 = vadd.f32 %v969_v29, %v643_v28 }
 0x1b1   : > { %v683_v33 = vmax.f32 %v644_v30, 0.0 }
 0x1b6   : > { %v645_v31 = vpop.f32.mrf.mxu2 }
 0x1b7   : > { %v646_v32 = vadd.f32 %v969_v29, %v645_v31 }
 0x1b9   : > { %v684_v34 = vmax.f32 %v646_v32, 0.0 }
 0x1bb   : > { %v899_v36 = vpack.c.bf16 %v684_v34, %v683_v33 }
 0x1bd   : > { %900 = vst [vmem:[%s1143_s11] sm:$0xff] %v899_v36  }
 0x1be   : > { %v648_v37 = vpop.f32.mrf.mxu2 }
 0x1bf   : > { %v649_v38 = vadd.f32 %v969_v29, %v648_v37 }
 0x1c1   : > { %v685_v41 = vmax.f32 %v649_v38, 0.0 }
 0x1c6   : > { %v650_v39 = vpop.f32.mrf.mxu2 }
 0x1c7   : > { %v651_v40 = vadd.f32 %v969_v29, %v650_v39 }
 0x1c9   : > { %v686_v42 = vmax.f32 %v651_v40, 0.0 }
 0x1cb   : > { %v904_v43 = vpack.c.bf16 %v686_v42, %v685_v41 }
 0x1cd   : > { %936 = vst [vmem:[%s1143_s11 + $0x8] sm:$0xff] %v904_v43  }
 0x1ce   : > { %v653_v44 = vpop.f32.mrf.mxu2 }
 0x1cf   : > { %v654_v45 = vadd.f32 %v969_v29, %v653_v44 }
 0x1d1   : > { %v687_v47 = vmax.f32 %v654_v45, 0.0 }
 0x1d6   : > { %v655_v46 = vpop.f32.mrf.mxu2 }
 0x1d7   : > { %v656_v35 = vadd.f32 %v969_v29, %v655_v46 }
 0x1d9   : > { %v688_v48 = vmax.f32 %v656_v35, 0.0 }
 0x1db   : > { %v909_v49 = vpack.c.bf16 %v688_v48, %v687_v47 }
 0x1dd   : > { %937 = vst [vmem:[%s1143_s11 + $0x10] sm:$0xff] %v909_v49  }
 0x1de   : > { %v658_v50 = vpop.f32.mrf.mxu2 }
 0x1df   : > { %v659_v51 = vadd.f32 %v969_v29, %v658_v50 }
 0x1e1   : > { %v689_v54 = vmax.f32 %v659_v51, 0.0 }
 0x1e6   : > { %v660_v52 = vpop.f32.mrf.mxu2 }
 0x1e7   : > { %v661_v53 = vadd.f32 %v969_v29, %v660_v52 }
 0x1e9   : > { %v690_v55 = vmax.f32 %v661_v53, 0.0 }
 0x1eb   : > { %v914_v56 = vpack.c.bf16 %v690_v55, %v689_v54 }
 0x1ed   : > { %938 = vst [vmem:[%s1143_s11 + $0x18] sm:$0xff] %v914_v56  }
 0x1ee   : > { %v663_v57 = vpop.f32.mrf.mxu2 }
 0x1ef   : > { %v664_v58 = vadd.f32 %v969_v29, %v663_v57 }
 0x1f1   : > { %v691_v61 = vmax.f32 %v664_v58, 0.0 }
 0x1f6   : > { %v665_v59 = vpop.f32.mrf.mxu2 }
 0x1f7   : > { %v666_v60 = vadd.f32 %v969_v29, %v665_v59 }
 0x1f9   : > { %v692_v62 = vmax.f32 %v666_v60, 0.0 }
 0x1fb   : > { %v919_v63 = vpack.c.bf16 %v692_v62, %v691_v61 }
 0x1fd   : > { %939 = vst [vmem:[%s1143_s11 + $0x20] sm:$0xff] %v919_v63  }
 0x1fe   : > { %v668_v0 = vpop.f32.mrf.mxu2 }
 0x1ff   : > { %v669_v1 = vadd.f32 %v969_v29, %v668_v0 }
 0x201   : > { %v693_v4 = vmax.f32 %v669_v1, 0.0 }
 0x206   : > { %v670_v2 = vpop.f32.mrf.mxu2 }
 0x207   : > { %v671_v3 = vadd.f32 %v969_v29, %v670_v2 }
 0x209   : > { %v694_v5 = vmax.f32 %v671_v3, 0.0 }
 0x20b   : > { %v924_v6 = vpack.c.bf16 %v694_v5, %v693_v4 }
 0x20d   : > { %940 = vst [vmem:[%s1143_s11 + $0x28] sm:$0xff] %v924_v6  }
 0x214   : > { %v673_v7 = vpop.f32.mrf.mxu3 }
 0x215   : > { %v674_v8 = vadd.f32 %v969_v29, %v673_v7 }
 0x217   : > { %v695_v11 = vmax.f32 %v674_v8, 0.0 }
 0x21c   : > { %v675_v9 = vpop.f32.mrf.mxu3 }
 0x21d   : > { %v676_v10 = vadd.f32 %v969_v29, %v675_v9 }
 0x21f   : > { %v696_v12 = vmax.f32 %v676_v10, 0.0 }
 0x221   : > { %v929_v13 = vpack.c.bf16 %v696_v12, %v695_v11 }
 0x223   : > { %941 = vst [vmem:[%s1143_s11 + $0x30] sm:$0xff] %v929_v13  }
 0x224   : > { %v678_v14 = vpop.f32.mrf.mxu3 }
 0x225   : > { %v679_v15 = vadd.f32 %v969_v29, %v678_v14 }
 0x227   : > { %v697_v18 = vmax.f32 %v679_v15, 0.0 }
 0x22c   : > { %v680_v16 = vpop.f32.mrf.mxu3 }
 0x22d   : > { %v681_v17 = vadd.f32 %v969_v29, %v680_v16 }
 0x22f   : > { %v698_v19 = vmax.f32 %v681_v17, 0.0 }
 0x231   : > { %v934_v20 = vpack.c.bf16 %v698_v19, %v697_v18 }
 0x233   : > { %942 = vst [vmem:[%s1143_s11 + $0x38] sm:$0xff] %v934_v20  }
 0x234 PF: > { %s17_s24 = sadd.s32 1, %s976_s24  }
 0x235   : > { %p14_p4 = scmp.ge.s32.totalorder %s17_s24, 4  }
 0x237   :  { %16 = sbr.rel (!%p14_p4) target bundleno = 1 (0x1), region = 78 }

</bundles_post_ra>
